<compile_context>
chip_gen: v6e
topology: v6e:2x2x1
jax: 0.10.0
libtpu: 0.0.40
codegen_flags: <defaults>
</compile_context>

<pallas_src>
import math
from functools import partial

import jax
import jax.numpy as jnp
from jax.experimental import pallas as pl
from jax.experimental.pallas import tpu as pltpu

PAD_INDEX = 0
EPS = 1e-12


# ---------------------------------------------------------------------------
# Pass 1: per-row (per token position) sums over the hidden dim D.
#   grid = (L, T); every step writes its own output block -> fully parallel.
# ---------------------------------------------------------------------------
def elmo_row_stats_kernel(states_ref, s1_ref, q1_ref):
    """states_ref: (1, R, D) LM states (native dtype, e.g. bf16)
       s1_ref    : (1, R, 1) f32, sum_d x
       q1_ref    : (1, R, 1) f32, sum_d x^2
    """
    x_native = states_ref[0]                                   # (R, D)
    x = x_native.astype(jnp.float32)
    d = x.shape[-1]
    if x_native.dtype == jnp.float32:
        # f32 ingest: keep exact f32 adds (default-precision f32 MXU would
        # truncate to bf16).
        s1_ref[0] = jnp.sum(x, axis=-1, keepdims=True)
    else:
        # sum over D on the otherwise-idle MXU (bf16-native, exact f32 accum).
        s1_ref[0] = jnp.dot(x_native, jnp.ones((d, 1), x_native.dtype),
                            preferred_element_type=jnp.float32)
    # sum of squares stays on the VPU/XLU reduce: exact f32 adds feed the
    # cancellation-prone variance expansion, and this pass is HBM-bound anyway.
    q1_ref[0] = jnp.sum(x * x, axis=-1, keepdims=True)


# ---------------------------------------------------------------------------
# Pass 2: weighted normalize-and-accumulate over layers.
#   grid = (T, L); T "parallel" (megacore), L "arbitrary" reduction into a
#   resident f32 accumulator block.
# ---------------------------------------------------------------------------
def elmo_combine_kernel(states_ref, mean_ref, scale_ref, out_ref):
    """states_ref: (1, R, D) native dtype; mean_ref/scale_ref: (1, R, 1) f32
       per-row combined LTN mean and folded scale
       (elmo_gamma * softmax(w)[l] * ltn_gamma[l] * rsqrt(var + eps));
       out_ref: (R, D) f32 resident accumulator."""
    l = pl.program_id(1)

    @pl.when(l == 0)
    def _():
        out_ref[...] = jnp.zeros_like(out_ref)

    x = states_ref[0].astype(jnp.float32)                      # (R, D)
    out_ref[...] += scale_ref[0] * (x - mean_ref[0])
    # TODO(synk): on v5e, if downstream accepts bf16, accumulate into an f32
    # VMEM scratch and write a bf16 out_ref only at l == L-1 to halve writeback.


# ---------------------------------------------------------------------------
# Sizing helpers (generation-aware VMEM budget, row-tile selection).
# ---------------------------------------------------------------------------
def _vmem_budget_bytes():
    """~80% of this generation's per-core VMEM (headroom for compiler scratch)."""
    try:
        cap = getattr(pltpu.get_tpu_info(), "vmem_capacity_bytes", 64 << 20)
    except Exception:
        cap = 64 << 20                      # conservative (v7x-sized) fallback
    return int(0.8 * cap)


def _vmem_limit(per_step_bytes, budget):
    # per-step blocks are double-buffered by the pipeline; add slack + a floor.
    need = 2 * per_step_bytes + (2 << 20)
    return max(min(need, budget), min(16 << 20, budget))


def _pick_tile_rows(n_rows, batch, d, state_itemsize, budget):
    """Largest row tile that keeps whole (s, b) groups together, is sublane
    aligned for the state dtype, divides N, and fits the VMEM budget."""
    per_row = 2 * d * (state_itemsize + 4) + 2048   # state + f32 out + row vecs
    max_rows = max(batch, (budget // 2) // per_row)
    step = math.lcm(batch, 16 if state_itemsize < 4 else 8)
    best = None
    r = step
    limit = min(n_rows, max_rows)
    while r <= limit:
        if n_rows % r == 0:
            best = r
        r += step
    return best if best is not None else n_rows


# ---------------------------------------------------------------------------
# Wrapper: two Pallas passes + tiny O(L*N) LearningToNorm statistics glue.
# ---------------------------------------------------------------------------
@partial(jax.jit, static_argnames=("tile_rows",))
def elmo_token_embedder(tokens_sb, states_lsbd, mean_weights, var_weights,
                        ltn_gamma, layer_weights, elmo_gamma, *, tile_rows=None):
    """tokens_sb: (S, B) int token ids; states_lsbd: (L, S, B, D) LM inner
    states with states_lsbd[l, s, b] = layer l's hidden state of token (s, b).
    Returns (S, B, D) float32 — the PyTorch module's output layout."""
    L, S, B, D = states_lsbd.shape
    N = S * B
    assert mean_weights.shape == (L, 4) and var_weights.shape == (L, 4), (
        "kernel hard-codes elmo_ltn_dims=3 (LTN weights of shape (L, 4))")

    budget = _vmem_budget_bytes()
    if tile_rows is None:
        tile_rows = _pick_tile_rows(N, B, D, states_lsbd.dtype.itemsize, budget)
    assert N % tile_rows == 0 and tile_rows % B == 0, (tile_rows, N, B)
    R = tile_rows
    T = N // R

    # ---- flatten (S, B) -> rows: every (N, D) tile is lane/sublane dense ----
    states = states_lsbd.reshape(L, N, D)            # contiguous: free reshape
    mask_rows = (tokens_sb.reshape(N) != PAD_INDEX).astype(jnp.float32)  # (N,)

    state_bytes = R * D * states.dtype.itemsize
    out_bytes = R * D * 4
    rowvec_bytes = 2 * ((R + 7) // 8) * 8 * 128 * 4   # (R,1) f32 blocks, lane-padded

    # ----------------- pass 1: per-row sums over D (Pallas) -----------------
    s1_raw, q1_raw = pl.pallas_call(
        elmo_row_stats_kernel,
        out_shape=(jax.ShapeDtypeStruct((L, N, 1), jnp.float32),
                   jax.ShapeDtypeStruct((L, N, 1), jnp.float32)),
        grid_spec=pltpu.PrefetchScalarGridSpec(
            num_scalar_prefetch=0,
            grid=(L, T),
            in_specs=[pl.BlockSpec((1, R, D), lambda l, t: (l, t, 0))],
            out_specs=[pl.BlockSpec((1, R, 1), lambda l, t: (l, t, 0)),
                       pl.BlockSpec((1, R, 1), lambda l, t: (l, t, 0))],
        ),
        compiler_params=pltpu.CompilerParams(
            dimension_semantics=("parallel", "parallel"),
            vmem_limit_bytes=_vmem_limit(state_bytes + rowvec_bytes, budget),
        ),
    )(states)

    # ----- tiny O(L*N) LearningToNorm statistics glue (2-D, lane-dense) -----
    m = mask_rows[None, :]                                       # (1, N)
    s1 = s1_raw[..., 0] * m                                      # (L, N) masked
    q1 = q1_raw[..., 0] * m
    n1 = jnp.broadcast_to(m * float(D), (L, N))

    def _mv(s, q, n):
        num = n + EPS
        mean = s / num
        # exact expansion of sum(mask*(x - mean)^2) = q - mean*(2*s - mean*n)
        var = (q - mean * (2.0 * s - mean * n)) / (num - 1.0)
        return mean, jnp.maximum(var, 0.0)           # clamp: cancellation guard

    m1, v1 = _mv(s1, q1, n1)                                     # per (s, b)
    v1 = jnp.where(n1 > 0.0, v1, 0.0)                            # padded rows
    s2 = s1.reshape(L, S, B).sum(axis=1)                         # per batch elt
    q2 = q1.reshape(L, S, B).sum(axis=1)
    n2 = n1.reshape(L, S, B).sum(axis=1)
    m2, v2 = _mv(s2, q2, n2)
    s3 = s2.sum(axis=-1, keepdims=True)                          # global
    q3 = q2.sum(axis=-1, keepdims=True)
    n3 = n2.sum(axis=-1, keepdims=True)
    m3, v3 = _mv(s3, q3, n3)

    mw = jax.nn.softmax(mean_weights.astype(jnp.float32), axis=-1)   # (L, 4)
    vw = jax.nn.softmax(var_weights.astype(jnp.float32), axis=-1)
    w = jax.nn.softmax(layer_weights.astype(jnp.float32), axis=-1)   # apply_softmax
    layer_scale = elmo_gamma[0] * w * ltn_gamma.astype(jnp.float32)  # (L,)

    def _rows(per_b):                        # (L, B) -> (L, N), row = s*B + b
        return jnp.broadcast_to(per_b[:, None, :], (L, S, B)).reshape(L, N)

    mean_rows = mw[:, 1:2] * m1 + _rows(mw[:, 2:3] * m2) + mw[:, 3:4] * m3
    var_rows = (vw[:, 0:1] + vw[:, 1:2] * v1 + _rows(vw[:, 2:3] * v2)
                + vw[:, 3:4] * v3)
    scale_rows = layer_scale[:, None] * jax.lax.rsqrt(
        jnp.maximum(var_rows, 0.0) + EPS)
    mean_rows = mean_rows[..., None]                             # (L, N, 1)
    scale_rows = scale_rows[..., None]

    # --------- pass 2: weighted normalize-and-accumulate (Pallas) -----------
    # NOTE: default depth-2 pipelining is kept; if profiling shows exposed DMA
    # at small tiles, raise the states spec to pipeline_mode=pl.Buffered(3).
    y = pl.pallas_call(
        elmo_combine_kernel,
        out_shape=jax.ShapeDtypeStruct((N, D), jnp.float32),
        grid_spec=pltpu.PrefetchScalarGridSpec(
            num_scalar_prefetch=0,
            grid=(T, L),
            in_specs=[
                pl.BlockSpec((1, R, D), lambda t, l: (l, t, 0)),   # states
                pl.BlockSpec((1, R, 1), lambda t, l: (l, t, 0)),   # mean rows
                pl.BlockSpec((1, R, 1), lambda t, l: (l, t, 0)),   # scale rows
            ],
            out_specs=pl.BlockSpec((R, D), lambda t, l: (t, 0)),
        ),
        compiler_params=pltpu.CompilerParams(
            dimension_semantics=("parallel", "arbitrary"),
            vmem_limit_bytes=_vmem_limit(
                state_bytes + out_bytes + rowvec_bytes, budget),
        ),
    )(states, mean_rows, scale_rows)

    return y.reshape(S, B, D)


# ---------------------------------------------------------------------------
# Pure-JAX reference mirroring the PyTorch forward (deviation-pass form).
# ---------------------------------------------------------------------------
def elmo_reference(tokens_sb, states_lsbd, mean_weights, var_weights,
                   ltn_gamma, layer_weights, elmo_gamma):
    L = states_lsbd.shape[0]
    mask2d = (tokens_sb != PAD_INDEX).astype(jnp.float32)            # (S, B)
    mw = jax.nn.softmax(mean_weights, axis=-1)
    vw = jax.nn.softmax(var_weights, axis=-1)
    w = jax.nn.softmax(layer_weights, axis=-1)
    y = jnp.zeros(states_lsbd.shape[1:], jnp.float32)
    for i in range(L):
        x = states_lsbd[i].astype(jnp.float32)                       # (S, B, D)
        mask = jnp.broadcast_to(mask2d[:, :, None], x.shape)
        masked = x * mask
        # level 1: reduce over D (per token position & batch element)
        num1 = mask.sum(-1, keepdims=True) + EPS
        m1 = masked.sum(-1, keepdims=True) / num1
        v1 = (((masked - m1) * mask) ** 2).sum(-1, keepdims=True) / (num1 - 1.0)
        # level 2: reduce over (S, D) per batch element -> axes (0, 2)
        num2 = mask.sum((0, 2), keepdims=True) + EPS
        m2 = masked.sum((0, 2), keepdims=True) / num2
        v2 = (((masked - m2) * mask) ** 2).sum((0, 2), keepdims=True) / (num2 - 1.0)
        # level 3: global
        num3 = mask.sum() + EPS
        m3 = masked.sum() / num3
        v3 = (((masked - m3) * mask) ** 2).sum() / (num3 - 1.0)
        mean = mw[i, 1] * m1 + mw[i, 2] * m2 + mw[i, 3] * m3
        var = vw[i, 0] + vw[i, 1] * v1 + vw[i, 2] * v2 + vw[i, 3] * v3
        y = y + w[i] * (ltn_gamma[i] * (x - mean) / jnp.sqrt(var + EPS))
    return elmo_gamma[0] * y


if __name__ == "__main__":
    key = jax.random.PRNGKey(0)
    k1, k2, k3, k4, k5 = jax.random.split(key, 5)

    LM_N_LAYERS = 3
    L = LM_N_LAYERS + 1          # n_layers = language_model.n_layers + 1
    B, S, D = 2, 16, 128         # batch, seq, hidden (lane-dense D)
    LTN_DIMS = 3

    # module input x: (slen, batch) token ids with some padding
    tokens_sb = jax.random.randint(k1, (S, B), 1, 100, dtype=jnp.int32)
    tokens_sb = tokens_sb.at[S - 2:, 0].set(PAD_INDEX)
    tokens_sb = tokens_sb.at[S - 1:, 1].set(PAD_INDEX)

    # synthetic LM inner states, (L, S, B, D), bf16 ingest
    states = jax.random.normal(k2, (L, S, B, D), dtype=jnp.float32).astype(jnp.bfloat16)

    # parameters (shapes per __init__, perturbed so softmaxes are non-trivial)
    mean_weights = 0.1 * jax.random.normal(k3, (L, LTN_DIMS + 1), dtype=jnp.float32)
    var_weights = 0.1 * jax.random.normal(k4, (L, LTN_DIMS + 1), dtype=jnp.float32)
    ltn_gamma = jnp.ones((L,), jnp.float32)                          # LTN .gamma/layer
    layer_weights = 1.0 + 0.1 * jax.random.normal(k5, (L,), dtype=jnp.float32)
    elmo_gamma = jnp.full((1,), 1.5, jnp.float32)                    # elmo_init_gamma

    y = elmo_token_embedder(tokens_sb, states, mean_weights, var_weights,
                            ltn_gamma, layer_weights, elmo_gamma,
                            tile_rows=16)            # N = S*B = 32 -> 2 row tiles
    y = jax.block_until_ready(y)

    y_ref = elmo_reference(tokens_sb, states, mean_weights, var_weights,
                           ltn_gamma, layer_weights, elmo_gamma)

    assert y.shape == (S, B, D), y.shape
    max_err = float(jnp.max(jnp.abs(y - y_ref)))
    if max_err < 1e-3:
        print("KERNEL_OK")
    else:
        print(f"MISMATCH max_err={max_err}")
</pallas_src>

<mosaic_0001>
module attributes {stable_mosaic.version = 11 : i64} {
  func.func @elmo_row_stats_kernel(%arg0: i32, %arg1: i32, %arg2: memref<1x16x128xbf16, #tpu.memory_space<vmem>>, %arg3: memref<1x16x1xf32, #tpu.memory_space<vmem>>, %arg4: memref<1x16x1xf32, #tpu.memory_space<vmem>>) attributes {dimension_semantics = [#tpu.dimension_semantics<parallel>, #tpu.dimension_semantics<parallel>], iteration_bounds = array<i64: 4, 2>, scalar_prefetch = 0 : i64, scratch_operands = 0 : i64, tpu.core_type = #tpu.core_type<tc>, window_params = [{transform_indices = @transform_0, window_bounds = array<i64: 1, 16, 128>}, {transform_indices = @transform_1, window_bounds = array<i64: 1, 16, 1>}, {transform_indices = @transform_2, window_bounds = array<i64: 1, 16, 1>}]} {
    %c0 = arith.constant 0 : index
    %c0_0 = arith.constant 0 : index
    %c0_1 = arith.constant 0 : index
    %0 = vector.load %arg2[%c0, %c0_0, %c0_1] : memref<1x16x128xbf16, #tpu.memory_space<vmem>>, vector<1x16x128xbf16>
    %1 = vector.shape_cast %0 : vector<1x16x128xbf16> to vector<16x128xbf16>
    %2 = arith.extf %1 : vector<16x128xbf16> to vector<16x128xf32>
    %cst = arith.constant 1.000000e+00 : bf16
    %3 = vector.broadcast %cst : bf16 to vector<128x1xbf16>
    %cst_2 = arith.constant dense<0.000000e+00> : vector<16x1xf32>
    %4 = tpu.matmul %1, %3, %cst_2 {dimension_numbers = #tpu.dot_dimension_numbers<[1], [0], [0], [1], [0, 0, 1, 1], [], []>} : vector<16x128xbf16>, vector<128x1xbf16>, vector<16x1xf32> -> vector<16x1xf32>
    %c0_3 = arith.constant 0 : index
    %c0_4 = arith.constant 0 : index
    %c0_5 = arith.constant 0 : index
    %5 = vector.load %arg3[%c0_3, %c0_4, %c0_5] : memref<1x16x1xf32, #tpu.memory_space<vmem>>, vector<1x16x1xf32>
    %6 = vector.shape_cast %5 : vector<1x16x1xf32> to vector<16x1xf32>
    %7 = vector.shape_cast %4 : vector<16x1xf32> to vector<1x16x1xf32>
    tpu.vector_store %arg3[%c0_3, %c0_4, %c0_5], %7 {strides = array<i32>} : memref<1x16x1xf32, #tpu.memory_space<vmem>>, vector<1x16x1xf32>,
    %8 = arith.mulf %2, %2 : vector<16x128xf32>
    %cst_6 = arith.constant dense<0.000000e+00> : vector<16xf32>
    %9 = vector.multi_reduction <add>, %8, %cst_6 [1] : vector<16x128xf32> to vector<16xf32>
    %10 = vector.shape_cast %9 : vector<16xf32> to vector<16x1xf32>
    %c0_7 = arith.constant 0 : index
    %c0_8 = arith.constant 0 : index
    %c0_9 = arith.constant 0 : index
    %11 = vector.load %arg4[%c0_7, %c0_8, %c0_9] : memref<1x16x1xf32, #tpu.memory_space<vmem>>, vector<1x16x1xf32>
    %12 = vector.shape_cast %11 : vector<1x16x1xf32> to vector<16x1xf32>
    %13 = vector.shape_cast %10 : vector<16x1xf32> to vector<1x16x1xf32>
    tpu.vector_store %arg4[%c0_7, %c0_8, %c0_9], %13 {strides = array<i32>} : memref<1x16x1xf32, #tpu.memory_space<vmem>>, vector<1x16x1xf32>,
    return
  }
  func.func @transform_0(%arg0: i32, %arg1: i32) -> (i32, i32, i32) {
    %c0_i32 = arith.constant 0 : i32
    %c0_i32_0 = arith.constant 0 : i32
    return %arg0, %arg1, %c0_i32 : i32, i32, i32
  }
  func.func @transform_1(%arg0: i32, %arg1: i32) -> (i32, i32, i32) {
    %c0_i32 = arith.constant 0 : i32
    %c0_i32_0 = arith.constant 0 : i32
    return %arg0, %arg1, %c0_i32 : i32, i32, i32
  }
  func.func @transform_2(%arg0: i32, %arg1: i32) -> (i32, i32, i32) {
    %c0_i32 = arith.constant 0 : i32
    %c0_i32_0 = arith.constant 0 : i32
    return %arg0, %arg1, %c0_i32 : i32, i32, i32
  }
}

module attributes {stable_mosaic.version = 11 : i64} {
  func.func @elmo_combine_kernel(%arg0: i32, %arg1: i32, %arg2: memref<1x16x128xbf16, #tpu.memory_space<vmem>>, %arg3: memref<1x16x1xf32, #tpu.memory_space<vmem>>, %arg4: memref<1x16x1xf32, #tpu.memory_space<vmem>>, %arg5: memref<16x128xf32, #tpu.memory_space<vmem>>) attributes {dimension_semantics = [#tpu.dimension_semantics<parallel>, #tpu.dimension_semantics<arbitrary>], iteration_bounds = array<i64: 2, 4>, scalar_prefetch = 0 : i64, scratch_operands = 0 : i64, tpu.core_type = #tpu.core_type<tc>, window_params = [{transform_indices = @transform_0, window_bounds = array<i64: 1, 16, 128>}, {transform_indices = @transform_1, window_bounds = array<i64: 1, 16, 1>}, {transform_indices = @transform_2, window_bounds = array<i64: 1, 16, 1>}, {transform_indices = @transform_3, window_bounds = array<i64: 16, 128>}]} {
    %c0_i32 = arith.constant 0 : i32
    %0 = arith.cmpi eq, %arg1, %c0_i32 : i32
    %1 = arith.extui %0 : i1 to i32
    %c0_i32_0 = arith.constant 0 : i32
    %2 = arith.cmpi ne, %1, %c0_i32_0 : i32
    scf.if %2 {
      %cst = arith.constant 0.000000e+00 : f32
      %17 = vector.broadcast %cst : f32 to vector<16x128xf32>
      %c0_13 = arith.constant 0 : index
      %c0_14 = arith.constant 0 : index
      %18 = vector.load %arg5[%c0_13, %c0_14] : memref<16x128xf32, #tpu.memory_space<vmem>>, vector<16x128xf32>
      tpu.vector_store %arg5[%c0_13, %c0_14], %17 {strides = array<i32>} : memref<16x128xf32, #tpu.memory_space<vmem>>, vector<16x128xf32>,
    } else {
    }
    %c0 = arith.constant 0 : index
    %c0_1 = arith.constant 0 : index
    %c0_2 = arith.constant 0 : index
    %3 = vector.load %arg2[%c0, %c0_1, %c0_2] : memref<1x16x128xbf16, #tpu.memory_space<vmem>>, vector<1x16x128xbf16>
    %4 = vector.shape_cast %3 : vector<1x16x128xbf16> to vector<16x128xbf16>
    %5 = arith.extf %4 : vector<16x128xbf16> to vector<16x128xf32>
    %c0_3 = arith.constant 0 : index
    %c0_4 = arith.constant 0 : index
    %6 = vector.load %arg5[%c0_3, %c0_4] : memref<16x128xf32, #tpu.memory_space<vmem>>, vector<16x128xf32>
    %c0_5 = arith.constant 0 : index
    %c0_6 = arith.constant 0 : index
    %c0_7 = arith.constant 0 : index
    %7 = vector.load %arg4[%c0_5, %c0_6, %c0_7] : memref<1x16x1xf32, #tpu.memory_space<vmem>>, vector<1x16x1xf32>
    %8 = vector.shape_cast %7 : vector<1x16x1xf32> to vector<16x1xf32>
    %c0_8 = arith.constant 0 : index
    %c0_9 = arith.constant 0 : index
    %c0_10 = arith.constant 0 : index
    %9 = vector.load %arg3[%c0_8, %c0_9, %c0_10] : memref<1x16x1xf32, #tpu.memory_space<vmem>>, vector<1x16x1xf32>
    %10 = vector.shape_cast %9 : vector<1x16x1xf32> to vector<16x1xf32>
    %11 = vector.broadcast %10 : vector<16x1xf32> to vector<16x128xf32>
    %12 = arith.subf %5, %11 : vector<16x128xf32>
    %13 = vector.broadcast %8 : vector<16x1xf32> to vector<16x128xf32>
    %14 = arith.mulf %13, %12 : vector<16x128xf32>
    %15 = arith.addf %6, %14 : vector<16x128xf32>
    %c0_11 = arith.constant 0 : index
    %c0_12 = arith.constant 0 : index
    %16 = vector.load %arg5[%c0_11, %c0_12] : memref<16x128xf32, #tpu.memory_space<vmem>>, vector<16x128xf32>
    tpu.vector_store %arg5[%c0_11, %c0_12], %15 {strides = array<i32>} : memref<16x128xf32, #tpu.memory_space<vmem>>, vector<16x128xf32>,
    return
  }
  func.func @transform_0(%arg0: i32, %arg1: i32) -> (i32, i32, i32) {
    %c0_i32 = arith.constant 0 : i32
    %c0_i32_0 = arith.constant 0 : i32
    return %arg1, %arg0, %c0_i32 : i32, i32, i32
  }
  func.func @transform_1(%arg0: i32, %arg1: i32) -> (i32, i32, i32) {
    %c0_i32 = arith.constant 0 : i32
    %c0_i32_0 = arith.constant 0 : i32
    return %arg1, %arg0, %c0_i32 : i32, i32, i32
  }
  func.func @transform_2(%arg0: i32, %arg1: i32) -> (i32, i32, i32) {
    %c0_i32 = arith.constant 0 : i32
    %c0_i32_0 = arith.constant 0 : i32
    return %arg1, %arg0, %c0_i32 : i32, i32, i32
  }
  func.func @transform_3(%arg0: i32, %arg1: i32) -> (i32, i32) {
    %c0_i32 = arith.constant 0 : i32
    %c0_i32_0 = arith.constant 0 : i32
    return %arg0, %c0_i32 : i32, i32
  }
}

</mosaic_0001>

<bundles_post_ra>
// kernel: elmo_token_embedder.2
= control target key start
LH: loop header
LB: loop body
LE: loop exit
PB: predicated region body
PF: predicated region fallthrough
CT: control target
= control target key end

     0   :  { %8 = vsyncpa [#allocation3], 0  ;;  %s798_s0 = inlined_call_operand.hbm [shape: bf16[4,32,128], index: 0, kind: input, shape index: {}]   ;;  %s799_s1 = inlined_call_operand.vmem [shape: f32[4,32,1], index: 1, kind: output, shape index: {0}]   ;;  %s800_s2 = inlined_call_operand.vmem [shape: f32[4,32,1], index: 2, kind: output, shape index: {1}]  }
   0x1   :  { %10 = vsyncpa [#allocation3 + $0x1], 0  ;;  %s671_s9 = smov 0   ;;  %s673_s10 = smov 0  }
   0x2   :  { %s675_s11 = smov 0   ;;  %s677_s12 = smov 0  }
   0x3   :  { %s679_s13 = smov 0   ;;  %s681_s14 = smov 0  }
   0x4   :  { %s683_s15 = smov 0   ;;  %s685_s16 = smov 0  }
   0x5 LB: > { %s428_s17 = sadd.s32 4294967295, %s648_s16   ;;  %s25_s18 = sadd.s32 1, %s640_s14  ;;  %s648_s16 = sphi %s685_s16, %s16_s16   ;;  %s644_s15 = sphi %s683_s15, %s810_s15   ;;  %s640_s14 = sphi %s681_s14, %s809_s14   ;;  %s636_s13 = sphi %s679_s13, %s808_s13   ;;  %s632_s12 = sphi %s677_s12, %s807_s12   ;;  %s628_s11 = sphi %s675_s11, %s806_s11   ;;  %s624_s10 = sphi %s673_s10, %s805_s10   ;;  %s620_s9 = sphi %s671_s9, %s804_s9  }
   0x6   : > { %p26_p0 = scmp.ge.s32.totalorder %s25_s18, 2  ;;  %s28_s19 = sadd.s32 1, %s644_s15 }
   0x7   : > { %s37_s20 = sadd.s32 1, %s628_s11  ;;  %p44_p1 = scmp.ne.s32.totalorder %s628_s11, %s624_s10 }
   0x8   : > { %s812_s18 = smov (%p26_p0, %s25_s18), 0  ;;  %s814_s19 = smov (!%p26_p0, %s28_s19), %s644_s15 }
   0x9   : > { %s33_s21 = ssub.s32 %s640_s14, %s812_s18  ;;  %p45_p2 = scmp.eq.s32.totalorder %s648_s16, 0 }
   0xa   : > { %p30_p3 = scmp.ge.s32.totalorder %s814_s19, 4  ;;  %p50_p4 = scmp.ne.s32.totalorder %s624_s10, %s620_s9 }
   0xb   : > { %p722_p5 = por %p45_p2, %p44_p1  ;;  %p51_p6 = scmp.eq.s32.totalorder %s428_s17, 0 }
   0xc   : > { %s816_s19 = smov (%p30_p3, %s814_s19), 0  ;;  %p482_p8 = scmp.lt.s32.totalorder %s648_s16, 8 }
   0xd   : > { %p728_p7 = por %p51_p6, %p50_p4  ;;  %s32_s24 = ssub.s32 %s644_s15, %s816_s19 }
   0xe   : > { %s34_s25 = sor.u32 %s33_s21, %s32_s24  ;;  %s130_s26 = sand.u32 1, %s628_s11  }
   0xf   : > { %p35_p9 = scmp.eq.s32.totalorder %s34_s25, 0  ;;  %s432_s27 = sshll.u32 %s130_s26, 3 }
  0x10   : > { %s433_s28 = sshll.u32 %s640_s14, 1  ;;  %s434_s30 = sshll.u32 %s644_s15, 2 }
  0x11   : > { %s738_s29 = scalar_select %p35_p9, %s628_s11, %s37_s20  }
  0x12   : > { %s140_s3 = sadd.s32 %s434_s30, %s433_s28  ;;  %s134_s4 = scalar_lea.vmem [#allocation2], %s432_s27 }
  0x13   : > { %s143_s5 = sshll.u32 %s134_s4, 4  ;;  %s435_s6 = sshll.u32 %s140_s3, 6  ;;  %s144_s5 = int_to_ptr.vmem [resolvable:$true] %s143_s5 }
  0x14   : > { %s142_s9 = scalar_lea.hbm %s798_s0, %s435_s6  ;;  %p748_p10 = pnand %p482_p8, %p722_p5 }
  0x15   : > { %p436_p11 = scmp.ge.s32.totalorder %s648_s16, 1  ;;  %s131_s20 = scalar_lea.sflag [#allocation3], %s130_s26 }
  0x16   : > { %p556_p12 = pneg %p748_p10  ;;  %s567_s21 = scalar_lea.vmem %s144_s5, 128 }
  0x17   : > { %p568_p13 = scmp.ne.s32.totalorder %s144_s5, %s567_s21  ;;  %s650_s24 = smov [#allocation2]  }
  0x18   : > { %s572_s25 = sshll.u32 %s650_s24, 4  ;;  %s573_s25 = int_to_ptr.vmem [resolvable:$false] %s572_s25 }
  0x19   : > { %p570_p0 = pnand %p568_p13, %p556_p12  ;;  %s574_s27 = scalar_lea.vmem %s573_s25, 256 }
  0x1a   : > { %p575_p2 = scmp.lt.s32.totalorder %s144_s5, %s573_s25  ;;  %p576_p3 = scmp.lt.s32.totalorder %s574_s27, %s567_s21 }
  0x1b   : > { %p571_p1 = pneg %p570_p0 }
  0x1c   : > { %p577_p4 = por %p576_p3, %p575_p2 }
  0x1e   : > { %p578_p5 = pnand %p577_p4, %p571_p1 }
  0x20   : > { %581 = shalt.err (!%p578_p5)
}
  0x21   : > { %s651_s22 = smov 64   ;;  %s652_s26 = smov 4  }
  0x22   : > { %481 = dma.hbm_to_vmem [thread:$0]  (!%p748_p10), %s142_s9, 128, %s144_s5, %s131_s20, %s651_s22, %s651_s22, %s652_s26  }
  0x23   : > { %p151_p6 = scmp.lt.s32.totalorder %s648_s16, 9 }
  0x25   : > { %p152_p8 = pnand %p436_p11, %p151_p6 }
  0x26   : > { %s157_s28 = sand.u32 (!%p152_p8), 1, %s624_s10  }
  0x27   : > { %155 = sbr.rel (%p152_p8) target bundleno = 277 (0x115), region = 24  ;;  %s437_s30 = sshll.u32 (!%p152_p8), %s157_s28, 3 }
  0x28   : > { %s158_s3 = scalar_lea.sflag (!%p152_p8), [#allocation3], %s157_s28  ;;  %s161_s4 = scalar_lea.vmem (!%p152_p8), [#allocation2], %s437_s30 }
  0x2c   : > { %615 = dma.done.wait (%p728_p7), %s158_s3, 128  }
  0x2d   : > { %617 = vsyncadd (%p728_p7), %s158_s3, 4294967168  ;;  %v653_v0 = vmov 0.0   ;;  %vm654_vm0 = vmmov 0   ;;  %v655_v1 = vmov 1065369472   ;;  %v218_v2 = vld [vmem:[%s161_s4] sm:$0xff]  }
  0x2e   : > { %456 = vmatprep.subr.bf16.mxu0 %v653_v0  ;;  %472 = vmatprep.mubr.msk.bf16.mxu0 %vm654_vm0, %v653_v0  ;;  %v220_v3 = vunpack.c.l.bf16 %v218_v2  ;;  %v221_v4 = vunpack.c.h.bf16 %v218_v2  ;;  %s438_s23 = sshll.u32 %s632_s12, 1  ;;  %p197_p7 = scmp.lt.s32.totalorder %s636_s13, 3  ;;  %vm269_vm1 = vcmask 7168  }
  0x2f   : > { %457 = vmatpush3.bf16.msra.mxu0 %v655_v1  ;;  %p199_p9 = scmp.lt.s32.totalorder %s438_s23, 3 }
  0x30   : > { %458 = vmatprep.subr.bf16.mxu0 %v653_v0  ;;  %v272_v5 = vmul.f32 %v220_v3, %v220_v3  ;;  %v273_v6 = vmul.f32 %v221_v4, %v221_v4  ;;  %s818_s13 = smov (!%p197_p7, %s636_s13), 3 }
  0x31   : > { %s820_s23 = smov (!%p199_p9, %s438_s23), 3  ;;  %s439_s5 = sshll.u32 %s818_s13, 2 }
  0x32   : > { %274 = vadd.xlane.f32.xlu0 %v272_v5  ;;  %s202_s6 = sadd.s32 %s439_s5, %s820_s23 }
  0x33   : > { %459 = vmatpush3.bf16.msra.mxu0 %v655_v1  ;;  %s440_s7 = sshll.u32 %s202_s6, 3 }
  0x34   : > { %460 = vmatprep.subr.bf16.mxu0 %v653_v0  ;;  %s214_s17 = scalar_lea.vmem %s800_s2, %s440_s7  ;;  %s204_s12 = scalar_lea.vmem %s799_s1, %s440_s7 }
  0x36   : > { %276 = vadd.xlane.f32.xlu0 %v273_v6 }
  0x37   : > { %461 = vmatpush3.bf16.msra.mxu0 %v655_v1 }
  0x38   : > { %462 = vmatprep.subr.bf16.mxu0 %v653_v0 }
  0x3b   : > { %463 = vmatpush3.bf16.msra.mxu0 %v655_v1 }
  0x3c   : > { %464 = vmatprep.subr.bf16.mxu0 %v653_v0 }
  0x3f   : > { %465 = vmatpush3.bf16.msra.mxu0 %v655_v1 }
  0x40   : > { %466 = vmatprep.subr.bf16.mxu0 %v653_v0 }
  0x43   : > { %467 = vmatpush3.bf16.msra.mxu0 %v655_v1 }
  0x44   : > { %468 = vmatprep.subr.bf16.mxu0 %v653_v0 }
  0x47   : > { %469 = vmatpush3.bf16.msra.mxu0 %v655_v1 }
  0x48   : > { %470 = vmatprep.subr.bf16.mxu0 %v653_v0 }
  0x4b   : > { %471 = vmatpush3.bf16.msra.mxu0 %v655_v1 }
  0x4e   : > { %473 = vmatmul.mubr.bf16.vlgmr.msra.gmra.mxu0 %v218_v2 }
  0xbb   : > { %v275_v7 = vpop.xlane.xlu0 %274 }
  0xbc   : > { %278 = vst.msk [vmem:[%s214_s17] sm:$0xff] %vm269_vm1, %v275_v7 }
  0xbf   : > { %v277_v8 = vpop.xlane.xlu0 %276 }
  0xc0   : > { %279 = vst.msk [vmem:[%s214_s17 + $0x8] sm:$0xff] %vm269_vm1, %v277_v8 }
 0x10e   : > { %v262_v9 = vpop.f32.mrf.mxu0 }
 0x10f   : > { %270 = vst.msk [vmem:[%s204_s12] sm:$0xff] %vm269_vm1, %v262_v9 }
 0x110   : > { %v474_v10 = vpop.f32.mrf.mxu0 }
 0x112   : > { %v265_v11 = vpop.f32.mrf.mxu0 }
 0x113   : > { %271 = vst.msk [vmem:[%s204_s12 + $0x8] sm:$0xff] %vm269_vm1, %v265_v11 }
 0x114   : > { %v475_v12 = vpop.f32.mrf.mxu0 }
 0x115 PF: > { %s16_s16 = sadd.s32 1, %s648_s16   ;;  %s804_s9 = smov %s624_s10 }
 0x116   : > { %p13_p10 = scmp.ge.s32.totalorder %s16_s16, 10   ;;  %s805_s10 = smov %s628_s11 }
 0x117   : > { %s806_s11 = smov %s738_s29  ;;  %s807_s12 = smov %s640_s14 }
 0x118   : > { %s808_s13 = smov %s644_s15  ;;  %s809_s14 = smov %s812_s18 }
 0x119   : > { %s810_s15 = smov %s816_s19  ;;  %15 = sbr.rel (!%p13_p10) target bundleno = 5 (0x5), region = 76 }
 0x11e   :  { %335 = vsyncpa [#allocation3], 1 }
 0x11f   :  { %337 = vsyncpa [#allocation3 + $0x1], 1 }

// kernel: elmo_token_embedder.3
= control target key start
LH: loop header
LB: loop body
LE: loop exit
PB: predicated region body
PF: predicated region fallthrough
CT: control target
= control target key end

     0   :  { %8 = vsyncpa [#allocation3], 0  ;;  %s820_s0 = inlined_call_operand.vmem [shape: bf16[4,32,128], index: 0, kind: input, shape index: {}]   ;;  %s821_s1 = inlined_call_operand.vmem [shape: f32[4,32,1], index: 1, kind: input, shape index: {}]   ;;  %s822_s2 = inlined_call_operand.vmem [shape: f32[4,32,1], index: 2, kind: input, shape index: {}]   ;;  %s823_s3 = inlined_call_operand.hbm [shape: f32[32,128], index: 3, kind: output, shape index: {}]  }
   0x1   :  { %10 = vsyncpa [#allocation3 + $0x1], 0  ;;  %s665_s12 = smov 0   ;;  %s667_s13 = smov 0  }
   0x2   :  { %s669_s14 = smov 0   ;;  %s671_s15 = smov 0  }
   0x3   :  { %s673_s16 = smov 0   ;;  %s675_s17 = smov 0  }
   0x4   :  { %s677_s18 = smov 0   ;;  %s679_s19 = smov 0  }
   0x5 LB: > { %827 = sst [smem:[#allocation5_spill]] %s634_s18  ;;  %s443_s20 = sadd.s32 4294967295, %s638_s19   ;;  %s638_s19 = sphi %s679_s19, %s16_s19   ;;  %s634_s18 = sphi %s677_s18, %s835_s18   ;;  %s630_s17 = sphi %s675_s17, %s840_s17   ;;  %s626_s16 = sphi %s673_s16, %s833_s16   ;;  %s622_s15 = sphi %s671_s15, %s839_s15   ;;  %s618_s14 = sphi %s669_s14, %s838_s14   ;;  %s614_s13 = sphi %s667_s13, %s837_s13   ;;  %s610_s12 = sphi %s665_s12, %s836_s12  }
   0x6   : > { %s444_s21 = sadd.s32 4294967294, %s638_s19   ;;  %s25_s22 = sadd.s32 1, %s630_s17 }
   0x7   : > { %p26_p0 = scmp.ge.s32.totalorder %s25_s22, 4  ;;  %s28_s23 = sadd.s32 1, %s634_s18 }
   0x8   : > { %p129_p1 = scmp.ne.s32.totalorder %s618_s14, %s614_s13  ;;  %p130_p2 = scmp.eq.s32.totalorder %s443_s20, 7 }
   0x9   : > { %s842_s22 = smov (%p26_p0, %s25_s22), 0  ;;  %s844_s23 = smov (!%p26_p0, %s28_s23), %s634_s18 }
   0xa   : > { %828 = sst [smem:[#allocation6_spill]] %s842_s22  ;;  %p714_p3 = por %p130_p2, %p129_p1 }
   0xb   : > { %p135_p4 = scmp.ne.s32.totalorder %s614_s13, %s610_s12  ;;  %p30_p5 = scmp.ge.s32.totalorder %s844_s23, 2 }
   0xc   : > { %p136_p6 = scmp.eq.s32.totalorder %s444_s21, 7  ;;  %p447_p7 = scmp.ge.s32.totalorder %s638_s19, 1 }
   0xd   : > { %p193_p8 = scmp.lt.s32.totalorder %s638_s19, 9  ;;  %s846_s23 = smov (%p30_p5, %s844_s23), 0 }
   0xe   : > { %830 = sst [smem:[#allocation7_spill]] %s846_s23  ;;  %p724_p9 = por %p136_p6, %p135_p4 }
   0xf   : > { %p194_p10 = pnand %p447_p7, %p193_p8  ;;  %s116_s26 = ssub.s32 %s634_s18, %s846_s23 }
  0x10   : > { %s119_s27 = sadd.s32 1, %s618_s14  ;;  %p117_p11 = scmp.eq.s32.totalorder %s116_s26, 0 }
  0x11   : > { %197 = sbr.rel (%p194_p10) target bundleno = 181 (0xb5), region = 32  ;;  %s825_s29 = sand.u32 (!%p194_p10), 1, %s614_s13  }
  0x12   : > { %s732_s28 = scalar_select %p117_p11, %s618_s14, %s119_s27  }
  0x13   : > { %s449_s30 = sshll.u32 (!%p194_p10), %s626_s16, 1  ;;  %s448_s4 = sshll.u32 (!%p194_p10), %s825_s29, 4 }
  0x14   : > { %p240_p12 = scmp.lt.s32.totalorder (!%p194_p10), %s622_s15, 3  ;;  %p242_p13 = scmp.lt.s32.totalorder (!%p194_p10), %s449_s30, 3 }
  0x15   : > { %s749_s18 = scalar_lea.vmem (!%p194_p10), [#allocation2], %s448_s4  ;;  %p458_p0 = scmp.ne.s32.totalorder (!%p194_p10), %s622_s15, 0 }
  0x16   : > { %s241_s5 = scalar_select %p240_p12, %s622_s15, 3 }
  0x17   : > { %s848_s30 = smov (!%p242_p13, %s449_s30), 3 }
  0x18   : > { %s450_s6 = sshll.u32 %s241_s5, 2  ;;  %273 = sbr.rel (%p458_p0) target bundleno = 31 (0x1f), region = 36 }
  0x19   : > { %s245_s7 = sadd.s32 %s450_s6, %s848_s30 }
  0x1a   : > { %s451_s8 = sshll.u32 %s245_s7, 2  ;;  %s454_s9 = sshll.u32 %s245_s7, 3 }
  0x1b   : > { %s247_s20 = scalar_lea.vmem %s820_s0, %s451_s8  ;;  %s257_s27 = scalar_lea.vmem %s821_s1, %s454_s9 }
  0x1c   : > { %s267_s29 = scalar_lea.vmem %s822_s2, %s454_s9 }
  0x1d   : > { %v640_v0 = vmov 0.0  }
  0x1e   : > { %274 = vst [vmem:[%s749_s18] sm:$0xff] %v640_v0  ;;  %275 = vst [vmem:[%s749_s18 + $0x8] sm:$0xff] %v640_v0 }
  0x1f PF: > { %v284_v1 = vld [vmem:[%s257_s27] sm:$0xff]  ;;  %v641_v3 = vmov 0   ;;  %v285_v4 = vld [vmem:[%s257_s27 + $0x8] sm:$0xff]  ;;  %s464_s15 = sshll.u32 %s626_s16, 8  ;;  %s328_s22 = sshll.u32 %s749_s18, 4  ;;  %s764_s22 = int_to_ptr.vmem [resolvable:$true] %s328_s22 }
  0x20   : > { %v282_v2 = vld [vmem:[%s267_s29] sm:$0xff]  ;;  %545 = vset.pattern.permute.xlu1 %v641_v3  ;;  %544 = vset.pattern.permute.xlu0 %v641_v3  ;;  %v283_v5 = vld [vmem:[%s267_s29 + $0x8] sm:$0xff]  ;;  %s762_s30 = scalar_lea.hbm %s823_s3, %s464_s15  ;;  %s832_s4 = sand.u32 1, %s614_s13  }
  0x21   : > { %288 = vperm.xlu0 %544, %v284_v1   ;;  %300 = vperm.xlu1 %545, %v282_v2   ;;  %v466_v6 = vld [vmem:[%s247_s20] sm:$0xff]   ;;  %s769_s5 = scalar_lea.sflag [#allocation3], %s832_s4  ;;  %s546_s16 = scalar_lea.vmem %s764_s22, 256 }
  0x22   : > { %v467_v7 = vunpack.c.l.bf16 %v466_v6  ;;  %v468_v11 = vunpack.c.h.bf16 %v466_v6  ;;  %p547_p1 = scmp.ne.s32.totalorder %s764_s22, %s546_s16  ;;  %s642_s6 = smov [#allocation2]  }
  0x23   : > { %s550_s7 = sshll.u32 %s642_s6, 4  ;;  %s551_s7 = int_to_ptr.vmem [resolvable:$false] %s550_s7 }
  0x24   : > { %p548_p2 = pnand %p547_p1, %p714_p3  ;;  %s552_s8 = scalar_lea.vmem %s551_s7, 512 }
  0x25   : > { %293 = vperm.xlu0 %544, %v285_v4   ;;  %305 = vperm.xlu1 %545, %v283_v5   ;;  %v280_v12 = vld [vmem:[%s749_s18] sm:$0xff]  ;;  %v281_v18 = vld [vmem:[%s749_s18 + $0x8] sm:$0xff]  ;;  %p553_p5 = scmp.lt.s32.totalorder %s764_s22, %s551_s7  ;;  %p554_p6 = scmp.lt.s32.totalorder %s552_s8, %s546_s16 }
  0x26   : > { %p549_p4 = pneg %p548_p2 }
  0x27   : > { %p555_p7 = por %p554_p6, %p553_p5 }
  0x29   : > { %p556_p8 = pnand %p555_p7, %p549_p4 }
  0x9c   : > { %v289_v8 = vpop.permute.xlu0 %288  ;;  %v301_v9 = vpop.permute.xlu1 %300 }
  0x9d   : > { %v296_v10 = vsub.f32 %v467_v7, %v289_v8 }
  0x9f   : > { %v308_v13 = vmul.f32 %v301_v9, %v296_v10 }
  0xa0   : > { %v294_v14 = vpop.permute.xlu0 %293  ;;  %v306_v17 = vpop.permute.xlu1 %305 }
  0xa1   : > { %v310_v15 = vadd.f32 %v308_v13, %v280_v12  ;;  %v297_v16 = vsub.f32 %v468_v11, %v294_v14 }
  0xa3   : > { %312 = vst [vmem:[%s749_s18] sm:$0xff] %v310_v15  ;;  %v309_v19 = vmul.f32 %v306_v17, %v297_v16 }
  0xa5   : > { %v311_v20 = vadd.f32 %v309_v19, %v281_v18 }
  0xa7   : > { %313 = vst [vmem:[%s749_s18 + $0x8] sm:$0xff] %v311_v20 }
  0xa8   : > { %559 = shalt.err (!%p556_p8)
}
  0xa9   : > { %s560_s18 = scalar_lea.hbm %s762_s30, 256  ;;  %s564_s11 = scalar_lea.hbm %s823_s3, 512 }
  0xaa   : > { %p561_p10 = scmp.ne.s32.totalorder %s762_s30, %s560_s18  ;;  %p565_p13 = scmp.lt.s32.totalorder %s762_s30, %s823_s3 }
  0xab   : > { %p566_p0 = scmp.lt.s32.totalorder %s564_s11, %s560_s18 }
  0xac   : > { %p562_p11 = pnand %p561_p10, %p714_p3 }
  0xad   : > { %p567_p1 = por %p566_p0, %p565_p13 }
  0xae   : > { %p563_p12 = pneg %p562_p11 }
  0xb0   : > { %p568_p2 = pnand %p567_p1, %p563_p12 }
  0xb2   : > { %571 = shalt.err (!%p568_p2)
}
  0xb3   : > { %s643_s26 = smov 128   ;;  %s644_s27 = smov 8  }
  0xb4   : > { %469 = dma.vmem_to_hbm [thread:$0]  (%p714_p3), %s764_s22, 256, %s762_s30, %s769_s5, %s643_s26, %s643_s26, %s644_s27  }
  0xb5 PF: > { %p475_p4 = scmp.ge.s32.totalorder %s638_s19, 2  ;;  %s343_s15 = sand.u32 1, %s610_s12  }
  0xb6   : > { %s344_s23 = scalar_lea.sflag [#allocation3], %s343_s15 }
  0xb7   : > { %p472_p5 = pnand %p475_p4, %p724_p9 }
  0xb9   : > { %p473_p6 = pneg %p472_p5 }
  0xbb   : > { %605 = dma.done.wait (%p473_p6), %s344_s23, 256  }
  0xbc   : > { %607 = vsyncadd (%p473_p6), %s344_s23, 4294967040  ;;  %s16_s19 = sadd.s32 1, %s638_s19   ;;  %s833_s16 = sld [smem:[#allocation5_spill]] }
  0xbd   : > { %p13_p7 = scmp.ge.s32.totalorder %s16_s19, 10   ;;  %s834_s24 = sld [smem:[#allocation6_spill]] }
  0xbe   : > { %s835_s18 = sld [smem:[#allocation7_spill]]  ;;  %s836_s12 = smov %s614_s13 }
  0xbf   : > { %s837_s13 = smov %s618_s14  ;;  %s838_s14 = smov %s732_s28 }
  0xc0   : > { %s839_s15 = smov %s630_s17  ;;  %15 = sbr.rel (!%p13_p7) target bundleno = 5 (0x5), region = 77 }
  0xc3   : > { %s840_s17 = smov %s834_s24 }
  0xc5   :  { %349 = vsyncpa [#allocation3], 1 }
  0xc6   :  { %351 = vsyncpa [#allocation3 + $0x1], 1 }

</bundles_post_ra>
